<compile_context>
chip_gen: v7x
topology: tpu7x:2x2x1
jax: 0.10.0
libtpu: 0.0.40
codegen_flags: <defaults>
</compile_context>

<pallas_src>
import functools

import jax
import jax.numpy as jnp
from jax.experimental import pallas as pl
from jax.experimental.pallas import tpu as pltpu


def _round_up(x, m):
    return ((x + m - 1) // m) * m


def _cdiv(a, b):
    return -(-a // b)


def _vmem_caps():
    """Generation-aware (budget, vmem_limit_bytes)."""
    try:
        cap = pltpu.get_tpu_info().vmem_capacity_bytes
    except Exception:
        cap = 64 * 1024 * 1024  # conservative fallback
    # v5e/v6e: 128 MiB physical -> allow 64 MiB scoped; v7x: 64 MiB -> ~45 MiB.
    budget = min(int(cap * 0.70), 64 * 1024 * 1024)
    limit = min(cap - (4 << 20), budget + (8 << 20))
    return budget, int(limit)


def _multi_tensorcore():
    """True only for chips where splitting the grid across cores can help
    (v7x: 2 TCs; v4/v5p megacore).  v5e/v6e are single-TC."""
    try:
        kind = jax.devices()[0].device_kind.lower()
    except Exception:
        return False
    if "lite" in kind or "v5e" in kind or "v6e" in kind:
        return False
    return any(t in kind for t in ("v7", "v4", "v5"))


def _vmem_bytes(tb, nROI, h1, h2, nout, x_dtype, w_itemsize=2):
    """Approximate VMEM footprint of one pipeline configuration."""
    lane = lambda n: _round_up(max(n, 1), 128)
    sub = lambda n: _round_up(max(n, 1), 8)
    x_item = jnp.dtype(x_dtype).itemsize
    x_b = 2 * sub(tb) * lane(nROI) * x_item            # double-buffered x tile
    o_b = 2 * sub(nout) * lane(tb) * 4                 # double-buffered (nout, tb) f32 out
    w_b = (sub(nROI) * lane(h1)                        # resident, single copy
           + sub(h1) * lane(h2)
           + sub(nout) * lane(h2)) * w_itemsize
    b_b = sub(2 + nout) * lane(h1) * 4                 # resident packed biases
    return x_b + o_b + w_b + b_b


def _pick_batch_tile(B, block_b, multi_core):
    """Large 128-multiple batch tile unless it covers the whole batch; on
    multi-TensorCore chips keep >=2 grid steps for non-trivial batches."""
    tb = min(block_b, B)
    if tb < B:
        tb = min(_round_up(tb, 128), B)
    if multi_core and B > 256 and B <= 2 * tb:
        tb = _round_up(_cdiv(B, 2), 128)
    return tb


def _ldisc_kernel(x_ref, w1_ref, w2_ref, w3t_ref, bias_ref, o_ref):
    # x_ref: (tb, nROI) batch tile (caller dtype); weights bf16, whole-array
    # VMEM residents; bias_ref: (2 + nout, h1) packed f32; o_ref: (nout, tb).
    nout = o_ref.shape[0]
    h2 = w2_ref.shape[1]
    b = bias_ref[...]                                  # (2 + nout, h1) f32

    # Downcast to bf16 in-kernel (no-op for bf16 callers): HBM stream stays at
    # the caller's dtype, MXU runs the fast bf16 path, accumulation is f32.
    x = x_ref[...].astype(jnp.bfloat16)

    # layer 1: Linear + LeakyReLU(0.2)
    a1 = jnp.dot(x, w1_ref[...], preferred_element_type=jnp.float32)
    a1 = a1 + b[0:1, :]
    a1 = jnp.where(a1 >= 0, a1, 0.2 * a1)

    # layer 2: Linear + LeakyReLU(0.2)
    a2 = jnp.dot(a1.astype(jnp.bfloat16), w2_ref[...],
                 preferred_element_type=jnp.float32)
    a2 = a2 + b[1:2, :h2]
    a2 = jnp.where(a2 >= 0, a2, 0.2 * a2)

    # layer 3: logits, emitted already transposed from the MXU as (nout, tb)
    # (contract last-with-last, the q@k^T pattern) -> lane-dense store, no
    # skewed (tb, 2) -> (2, tb) XLU relayout.
    a3t = jax.lax.dot_general(
        w3t_ref[...], a2.astype(jnp.bfloat16),
        dimension_numbers=(((1,), (1,)), ((), ())),
        preferred_element_type=jnp.float32)
    a3t = a3t + b[2:2 + nout, 0:1]                     # (nout, 1) column bias
    o_ref[...] = a3t.astype(o_ref.dtype)


@functools.partial(jax.jit,
                   static_argnames=("tb", "vmem_limit", "transposed_output"))
def _ldisc_forward(x, w1, w2, w3t, bias, *, tb, vmem_limit, transposed_output):
    B, nROI = x.shape
    h1 = w1.shape[1]
    nout = w3t.shape[0]
    grid = (pl.cdiv(B, tb),)

    vmem_full = pl.BlockSpec(memory_space=pltpu.MemorySpace.VMEM)

    out_t = pl.pallas_call(
        _ldisc_kernel,
        # lane-dense (transposed) output: (nout, B) so stores are dense vst.
        out_shape=jax.ShapeDtypeStruct((nout, B), jnp.float32),
        grid_spec=pltpu.PrefetchScalarGridSpec(
            num_scalar_prefetch=0,
            grid=grid,
            in_specs=[
                pl.BlockSpec((tb, nROI), lambda i: (i, 0)),   # x tile, pipelined
                vmem_full,                                    # w1 resident
                vmem_full,                                    # w2 resident
                vmem_full,                                    # w3^T resident
                vmem_full,                                    # packed biases
            ],
            out_specs=pl.BlockSpec((nout, tb), lambda i: (0, i)),
        ),
        compiler_params=pltpu.CompilerParams(
            dimension_semantics=("parallel",),
            vmem_limit_bytes=vmem_limit),
    )(x, w1, w2, w3t, bias)

    if transposed_output:
        return out_t            # (nout, B): cheapest layout for fused consumers
    return out_t.T              # (B, nout): matches the PyTorch module


def ldiscriminator_forward(x, prepared, block_b=2048, transposed_output=False):
    """x: (B, nROI) f32 or bf16.  `prepared` comes from prepare_params()."""
    w1, w2, w3t, bias = prepared["w1"], prepared["w2"], prepared["w3t"], prepared["bias"]
    B, nROI = x.shape
    h1, h2, nout = w1.shape[1], w2.shape[1], w3t.shape[0]

    budget, vmem_limit = _vmem_caps()
    tb = _pick_batch_tile(B, block_b, _multi_tensorcore())
    w_item = jnp.dtype(w1.dtype).itemsize
    while tb > 128 and _vmem_bytes(tb, nROI, h1, h2, nout, x.dtype, w_item) > budget:
        tb = max(128, _round_up(tb // 2, 128))
    if _vmem_bytes(tb, nROI, h1, h2, nout, x.dtype, w_item) > budget:
        # TODO(synk): K-tile w1 along nROI when the resident weights alone
        # exceed the per-core VMEM budget (only relevant for very large nROI).
        raise ValueError("LDiscriminator weights exceed the VMEM budget; "
                         "K-tiling of w1 is not implemented.")

    return _ldisc_forward(x, w1, w2, w3t, bias, tb=tb,
                          vmem_limit=vmem_limit,
                          transposed_output=transposed_output)


def prepare_params(params, compute_dtype=jnp.bfloat16):
    """One-time packing (do this OUTSIDE the per-step path):
      * cast weights to `compute_dtype` (explicit precision knob; bf16 default
        deviates from f32 torch at the ~1e-3 level, fine for a GAN disc.)
      * pre-transpose w3 to (nout, h2) so layer 3 emits (nout, tb) directly
      * pack the three biases into one (2 + nout, h1) f32 block (one DMA)."""
    w1 = params["w1"].astype(compute_dtype)            # (nROI, h1)
    w2 = params["w2"].astype(compute_dtype)            # (h1, h2)
    w3t = params["w3"].T.astype(compute_dtype)         # (nout, h2)
    h1, h2, nout = w1.shape[1], w2.shape[1], w3t.shape[0]
    bias = jnp.zeros((2 + nout, h1), jnp.float32)
    bias = bias.at[0, :h1].set(params["b1"].reshape(-1).astype(jnp.float32))
    bias = bias.at[1, :h2].set(params["b2"].reshape(-1).astype(jnp.float32))
    bias = bias.at[2:2 + nout, 0].set(params["b3"].reshape(-1).astype(jnp.float32))
    return {"w1": w1, "w2": w2, "w3t": w3t, "bias": bias}


def init_params(key, nROI):
    """Deterministic synthetic parameters (torch-Linear-style uniform init)."""
    h1, h2, nout = nROI // 2, nROI // 4, 2
    ks = jax.random.split(key, 6)

    def lin(kw, kb, fan_in, fan_out):
        bound = 1.0 / jnp.sqrt(fan_in)
        # stored as (in, out): transpose of torch's (out, in) weight
        w = jax.random.uniform(kw, (fan_in, fan_out), jnp.float32, -bound, bound)
        b = jax.random.uniform(kb, (1, fan_out), jnp.float32, -bound, bound)
        return w, b

    w1, b1 = lin(ks[0], ks[1], nROI, h1)
    w2, b2 = lin(ks[2], ks[3], h1, h2)
    w3, b3 = lin(ks[4], ks[5], h2, nout)
    return {"w1": w1, "b1": b1, "w2": w2, "b2": b2, "w3": w3, "b3": b3}


def reference_forward(x, p):
    """Pure-JAX reference matching the kernel's numerics (bf16 in, f32 accum)."""
    lrelu = lambda t: jnp.where(t >= 0, t, 0.2 * t)
    xb = x.astype(jnp.bfloat16)
    w1 = p["w1"].astype(jnp.bfloat16)
    w2 = p["w2"].astype(jnp.bfloat16)
    w3 = p["w3"].astype(jnp.bfloat16)
    h = jnp.dot(xb, w1, preferred_element_type=jnp.float32) + p["b1"]
    h = lrelu(h)
    h = jnp.dot(h.astype(jnp.bfloat16), w2, preferred_element_type=jnp.float32) + p["b2"]
    h = lrelu(h)
    return jnp.dot(h.astype(jnp.bfloat16), w3, preferred_element_type=jnp.float32) + p["b3"]


if __name__ == "__main__":
    key = jax.random.PRNGKey(0)
    k_x, k_p = jax.random.split(key)

    batch, nROI = 8, 32          # small shapes; nROI must be divisible by 4
    x = jax.random.normal(k_x, (batch, nROI), jnp.float32)
    params = init_params(k_p, nROI)
    prepared = prepare_params(params)   # one-time cast / transpose / bias pack

    out = ldiscriminator_forward(x, prepared)
    out = jax.block_until_ready(out)

    ref = reference_forward(x, params)
    assert out.shape == (batch, 2), out.shape
    err = jnp.max(jnp.abs(out - ref))
    assert jnp.allclose(out, ref, atol=2e-3, rtol=2e-3), f"mismatch vs reference: {err}"

    print("KERNEL_OK")
</pallas_src>

<mosaic_0001>
module attributes {stable_mosaic.version = 11 : i64} {
  func.func @_ldisc_kernel(%arg0: i32, %arg1: memref<8x32xf32, #tpu.memory_space<vmem>>, %arg2: memref<32x16xbf16, #tpu.memory_space<vmem>>, %arg3: memref<16x8xbf16, #tpu.memory_space<vmem>>, %arg4: memref<2x8xbf16, #tpu.memory_space<vmem>>, %arg5: memref<4x16xf32, #tpu.memory_space<vmem>>, %arg6: memref<2x8xf32, #tpu.memory_space<vmem>>) attributes {dimension_semantics = [#tpu.dimension_semantics<parallel>], iteration_bounds = array<i64: 1>, scalar_prefetch = 0 : i64, scratch_operands = 0 : i64, tpu.core_type = #tpu.core_type<tc>, window_params = [{transform_indices = @transform_0, window_bounds = array<i64: 8, 32>}, {pipeline_mode = #tpu.pipeline_mode<synchronous>, transform_indices = @transform_1, window_bounds = array<i64: 32, 16>}, {pipeline_mode = #tpu.pipeline_mode<synchronous>, transform_indices = @transform_2, window_bounds = array<i64: 16, 8>}, {pipeline_mode = #tpu.pipeline_mode<synchronous>, transform_indices = @transform_3, window_bounds = array<i64: 2, 8>}, {pipeline_mode = #tpu.pipeline_mode<synchronous>, transform_indices = @transform_4, window_bounds = array<i64: 4, 16>}, {transform_indices = @transform_5, window_bounds = array<i64: 2, 8>}]} {
    %c0 = arith.constant 0 : index
    %c0_0 = arith.constant 0 : index
    %0 = vector.load %arg5[%c0, %c0_0] : memref<4x16xf32, #tpu.memory_space<vmem>>, vector<4x16xf32>
    %c0_1 = arith.constant 0 : index
    %c0_2 = arith.constant 0 : index
    %1 = vector.load %arg1[%c0_1, %c0_2] : memref<8x32xf32, #tpu.memory_space<vmem>>, vector<8x32xf32>
    %2 = arith.truncf %1 : vector<8x32xf32> to vector<8x32xbf16>
    %c0_3 = arith.constant 0 : index
    %c0_4 = arith.constant 0 : index
    %3 = vector.load %arg2[%c0_3, %c0_4] : memref<32x16xbf16, #tpu.memory_space<vmem>>, vector<32x16xbf16>
    %cst = arith.constant dense<0.000000e+00> : vector<8x16xf32>
    %4 = tpu.matmul %2, %3, %cst {dimension_numbers = #tpu.dot_dimension_numbers<[1], [0], [0], [1], [0, 0, 1, 1], [], []>} : vector<8x32xbf16>, vector<32x16xbf16>, vector<8x16xf32> -> vector<8x16xf32>
    %5 = vector.extract_strided_slice %0 {offsets = [0, 0], sizes = [1, 16], strides = [1, 1]} : vector<4x16xf32> to vector<1x16xf32>
    %6 = vector.broadcast %5 : vector<1x16xf32> to vector<8x16xf32>
    %7 = arith.addf %4, %6 : vector<8x16xf32>
    %cst_5 = arith.constant 0.000000e+00 : f32
    %8 = vector.broadcast %cst_5 : f32 to vector<8x16xf32>
    %9 = arith.cmpf oge, %7, %8 : vector<8x16xf32>
    %cst_6 = arith.constant 2.000000e-01 : f32
    %10 = vector.broadcast %cst_6 : f32 to vector<8x16xf32>
    %11 = arith.mulf %10, %7 : vector<8x16xf32>
    %12 = arith.select %9, %7, %11 : vector<8x16xi1>, vector<8x16xf32>
    %13 = arith.truncf %12 : vector<8x16xf32> to vector<8x16xbf16>
    %c0_7 = arith.constant 0 : index
    %c0_8 = arith.constant 0 : index
    %14 = vector.load %arg3[%c0_7, %c0_8] : memref<16x8xbf16, #tpu.memory_space<vmem>>, vector<16x8xbf16>
    %cst_9 = arith.constant dense<0.000000e+00> : vector<8x8xf32>
    %15 = tpu.matmul %13, %14, %cst_9 {dimension_numbers = #tpu.dot_dimension_numbers<[1], [0], [0], [1], [0, 0, 1, 1], [], []>} : vector<8x16xbf16>, vector<16x8xbf16>, vector<8x8xf32> -> vector<8x8xf32>
    %16 = vector.extract_strided_slice %0 {offsets = [1, 0], sizes = [1, 8], strides = [1, 1]} : vector<4x16xf32> to vector<1x8xf32>
    %17 = vector.broadcast %16 : vector<1x8xf32> to vector<8x8xf32>
    %18 = arith.addf %15, %17 : vector<8x8xf32>
    %cst_10 = arith.constant 0.000000e+00 : f32
    %19 = vector.broadcast %cst_10 : f32 to vector<8x8xf32>
    %20 = arith.cmpf oge, %18, %19 : vector<8x8xf32>
    %cst_11 = arith.constant 2.000000e-01 : f32
    %21 = vector.broadcast %cst_11 : f32 to vector<8x8xf32>
    %22 = arith.mulf %21, %18 : vector<8x8xf32>
    %23 = arith.select %20, %18, %22 : vector<8x8xi1>, vector<8x8xf32>
    %c0_12 = arith.constant 0 : index
    %c0_13 = arith.constant 0 : index
    %24 = vector.load %arg4[%c0_12, %c0_13] : memref<2x8xbf16, #tpu.memory_space<vmem>>, vector<2x8xbf16>
    %25 = arith.truncf %23 : vector<8x8xf32> to vector<8x8xbf16>
    %cst_14 = arith.constant dense<0.000000e+00> : vector<2x8xf32>
    %26 = tpu.matmul %24, %25, %cst_14 {dimension_numbers = #tpu.dot_dimension_numbers<[1], [1], [0], [0], [0, 0, 1, 0], [], []>} : vector<2x8xbf16>, vector<8x8xbf16>, vector<2x8xf32> -> vector<2x8xf32>
    %27 = vector.extract_strided_slice %0 {offsets = [2, 0], sizes = [2, 1], strides = [1, 1]} : vector<4x16xf32> to vector<2x1xf32>
    %28 = vector.broadcast %27 : vector<2x1xf32> to vector<2x8xf32>
    %29 = arith.addf %26, %28 : vector<2x8xf32>
    %c0_15 = arith.constant 0 : index
    %c0_16 = arith.constant 0 : index
    %30 = vector.load %arg6[%c0_15, %c0_16] : memref<2x8xf32, #tpu.memory_space<vmem>>, vector<2x8xf32>
    tpu.vector_store %arg6[%c0_15, %c0_16], %29 {strides = array<i32>} : memref<2x8xf32, #tpu.memory_space<vmem>>, vector<2x8xf32>,
    return
  }
  func.func @transform_0(%arg0: i32) -> (i32, i32) {
    %c0_i32 = arith.constant 0 : i32
    %c0_i32_0 = arith.constant 0 : i32
    return %arg0, %c0_i32 : i32, i32
  }
  func.func @transform_1(%arg0: i32) -> (i32, i32) {
    %c0_i32 = arith.constant 0 : i32
    %c0_i32_0 = arith.constant 0 : i32
    %c0_i32_1 = arith.constant 0 : i32
    return %c0_i32, %c0_i32_0 : i32, i32
  }
  func.func @transform_2(%arg0: i32) -> (i32, i32) {
    %c0_i32 = arith.constant 0 : i32
    %c0_i32_0 = arith.constant 0 : i32
    %c0_i32_1 = arith.constant 0 : i32
    return %c0_i32, %c0_i32_0 : i32, i32
  }
  func.func @transform_3(%arg0: i32) -> (i32, i32) {
    %c0_i32 = arith.constant 0 : i32
    %c0_i32_0 = arith.constant 0 : i32
    %c0_i32_1 = arith.constant 0 : i32
    return %c0_i32, %c0_i32_0 : i32, i32
  }
  func.func @transform_4(%arg0: i32) -> (i32, i32) {
    %c0_i32 = arith.constant 0 : i32
    %c0_i32_0 = arith.constant 0 : i32
    %c0_i32_1 = arith.constant 0 : i32
    return %c0_i32, %c0_i32_0 : i32, i32
  }
  func.func @transform_5(%arg0: i32) -> (i32, i32) {
    %c0_i32 = arith.constant 0 : i32
    %c0_i32_0 = arith.constant 0 : i32
    return %c0_i32, %arg0 : i32, i32
  }
}

</mosaic_0001>

<bundles_post_ra>
// kernel: _ldisc_forward.1
= control target key start
LH: loop header
LB: loop body
LE: loop exit
PB: predicated region body
PF: predicated region fallthrough
CT: control target
= control target key end

     0   :  { %v288_v1 = vmov 0.0   ;;  %vm289_vm0 = vmmov 0   ;;  %s355_s0 = inlined_call_operand.vmem [shape: f32[8,32], index: 0, kind: input, shape index: {}]   ;;  %s356_s1 = inlined_call_operand.vmem [shape: bf16[32,16], index: 1, kind: input, shape index: {}]   ;;  %s357_s2 = inlined_call_operand.vmem [shape: bf16[16,8], index: 2, kind: input, shape index: {}]   ;;  %s358_s3 = inlined_call_operand.vmem [shape: bf16[2,8], index: 3, kind: input, shape index: {}]   ;;  %s359_s4 = inlined_call_operand.vmem [shape: f32[4,16], index: 4, kind: input, shape index: {}]   ;;  %s360_s5 = inlined_call_operand.hbm [shape: f32[2,8], index: 5, kind: output, shape index: {}]  }
   0x1   :  { %v261_v0 = vld [vmem:[%s356_s1] sm:$0xff]   ;;  %236 = vmatprep.subr.bf16.mxu0 %v288_v1  ;;  %244 = vmatprep.subr.bf16.mxu1 %v288_v1  ;;  %v262_v2 = vld [vmem:[%s356_s1 + $0x8] sm:$0xff]  }
   0x2   :  { %237 = vmatpush3.bf16.msra.mxu0 %v261_v0  ;;  %240 = vmatprep.mubr.msk.bf16.mxu0 %vm289_vm0, %v288_v1  ;;  %v23_v3 = vld [vmem:[%s355_s0] sm:$0xff] }
   0x3   :  { %238 = vmatprep.subr.bf16.mxu0 %v288_v1  ;;  %246 = vmatprep.mubr.msk.bf16.mxu1 %vm289_vm0, %v288_v1 }
   0x4   :  { %10 = vsyncpa [#allocation3], 0  ;;  %v24_v4 = vpack.c.bf16 %v23_v3, %v23_v3  ;;  %vm45_vm1 = vcmask 261120   ;;  %v263_v5 = vld [vmem:[%s357_s2] sm:$0xff]   ;;  %v29_v6 = vlaneseq  ;;  %vm105_vm3 = vcmask 130048  }
   0x5   :  { %245 = vmatpush3.bf16.msra.mxu1 %v263_v5  ;;  %v22_v9 = vld [vmem:[%s359_s4] sm:$0xf]  ;;  %v290_v19 = vmov 0   ;;  %vm160_vm5 = vcmask 64512   ;;  %s291_s4 = smov [#allocation2]   ;;  %vm207_vm6 = vcmask 58368  }
   0x6   :  { %239 = vmatpush3.bf16.msra.mxu0 %v262_v2  ;;  %250 = vmatprep.subr.bf16.mxu1 %v288_v1  ;;  %v30_v7 = vshrl.u32 %v29_v6, 7  ;;  %v152_v31 = vld [vmem:[%s358_s3] sm:$0x1]  ;;  %s215_s27 = sshll.u32 %s291_s4, 4  ;;  %s216_s27 = int_to_ptr.vmem [resolvable:$true] %s215_s27 }
   0x7   :  { %260 = vset.pattern.permute.xlu0 %v290_v19  ;;  %s264_s28 = scalar_lea.vmem %s216_s27, 32  ;;  %p269_p1 = scmp.lt.s32.totalorder %s216_s27, %s216_s27 }
   0x8   :  { %v31_v8 = vsub.s32 0, %v30_v7  ;;  %156 = vperm.xlu0 %260, %v22_v9   ;;  %v97_v20 = vsub.s32 1, %v30_v7  ;;  %p265_p0 = scmp.ne.s32.totalorder %s216_s27, %s264_s28  ;;  %p270_p2 = scmp.lt.s32.totalorder %s264_s28, %s264_s28 }
   0x9   :  { %241 = vmatmul.mubr.msk.bf16.vlgmr.msra.gmra.mrb[0].mxu0 %vm45_vm1, %v24_v4 }
   0xa   :  { %v32_v10 = vrot.slane %v22_v9, %v31_v8  ;;  %v98_v21 = vrot.slane %v22_v9, %v97_v20  ;;  %p271_p3 = por %p270_p2, %p269_p1 }
   0xc   :  { %p272_p4 = pnand %p271_p3, %p265_p0 }
  0x87   :  { %v157_v32 = vpop.permute.xlu0 %156 }
  0x88   :  { %v158_v33 = vrot.slane %v157_v32, 2 }
  0xdc   :  { %v83_v11 = vpop.f32.mrb[0].mxu0 }
  0xdd   :  { %v84_v12 = vadd.f32 %v83_v11, %v32_v10  ;;  %v242_v13 = vpop.f32.mrb[1].mxu0 }
  0xde   :  { %v86_v14 = vpop.f32.mrb[2].mxu0 }
  0xdf   :  { %vm89_vm2 = vcmp.ge.f32.partialorder %v84_v12, 0.0  ;;  %v90_v15 = vmul.f32 0.2, %v84_v12  ;;  %v243_v16 = vpop.f32.mrb[3].mxu0 }
  0xe1   :  { %v91_v17 = vsel %vm89_vm2, %v84_v12, %v90_v15 }
  0xe2   :  { %v92_v18 = vpack.c.bf16 %v91_v17, %v91_v17 }
  0xe4   :  { %247 = vmatmul.mubr.msk.bf16.vlgmr.msra.gmra.mrb[0].mxu1 %vm105_vm3, %v92_v18 }
  0xe5   :  { %252 = vmatprep.mubr.msk.bf16.mxu1 %vm289_vm0, %v288_v1 }
 0x1b7   :  { %v143_v22 = vpop.f32.mrb[0].mxu1 }
 0x1b8   :  { %v144_v23 = vadd.f32 %v143_v22, %v98_v21  ;;  %v248_v24 = vpop.f32.mrb[1].mxu1 }
 0x1b9   :  { %v146_v25 = vpop.f32.mrb[2].mxu1 }
 0x1ba   :  { %vm149_vm4 = vcmp.ge.f32.partialorder %v144_v23, 0.0  ;;  %v150_v26 = vmul.f32 0.2, %v144_v23  ;;  %v249_v27 = vpop.f32.mrb[3].mxu1 }
 0x1bc   :  { %v151_v28 = vsel %vm149_vm4, %v144_v23, %v150_v26 }
 0x1bd   :  { %v153_v29 = vpack.c.bf16 %v151_v28, %v151_v28 }
 0x1bf   :  { %v165_v30 = vsel %vm160_vm5, %v153_v29, 0 }
 0x1c0   :  { %251 = vmatpush3.bf16.xpose.msra.mxu1 %v165_v30 }
 0x1c7   :  { %253 = vmatmul.mubr.msk.bf16.vlgmr.msra.gmra.mrb[4].mxu1 %vm160_vm5, %v152_v31 }
 0x29a   :  { %v201_v34 = vpop.f32.mrb[4].mxu1 }
 0x29b   :  { %v202_v35 = vadd.f32 %v201_v34, %v158_v33  ;;  %v254_v36 = vpop.f32.mrb[5].mxu1 }
 0x29c   :  { %v204_v37 = vpop.f32.mrb[6].mxu1 }
 0x29d   :  { %v255_v38 = vpop.f32.mrb[7].mxu1  ;;  %208 = vst.msk [vmem:[#allocation2] sm:$0x3] %vm207_vm6, %v202_v35 }
 0x29e   :  { %275 = shalt.err (!%p272_p4)
}
 0x29f   :  { %s276_s30 = scalar_lea.hbm %s360_s5, 32 }
 0x2a0   :  { %p277_p5 = scmp.ne.s32.totalorder %s360_s5, %s276_s30  ;;  %p280_p6 = scmp.lt.u32.totalorder %s276_s30, %s360_s5 }
 0x2a2   :  { %p282_p7 = pnand %p280_p6, %p277_p5 }
 0x2a4   :  { %285 = shalt.err (!%p282_p7)
}
 0x2a5   :  { %218 = dma.vmem_to_hbm [thread:$0]  %s216_s27, 32, %s360_s5, [#allocation3]  }
 0x2a6   :  { %286 = dma.done.wait [#allocation3], 32  }
 0x2a7   :  { %287 = vsyncadd [#allocation3], 4294967264 }
 0x2a8   :  { %222 = vsyncpa [#allocation3], 1 }

</bundles_post_ra>
